<compile_context>
chip_gen: v7x
topology: tpu7x:2x2x1
jax: 0.10.0
libtpu: 0.0.40
codegen_flags: <defaults>
</compile_context>

<pallas_src>
import jax
import jax.numpy as jnp
from jax.experimental import pallas as pl
from jax.experimental.pallas import tpu as pltpu

# ----------------------------- model dims (small test sizes) -----------------
B = 2          # batch
S = 8          # sequence length
D = 32         # d_model
H = 4          # nhead
DH = D // H    # head dim
DFF = 64       # dim_feedforward
EPS = 1e-5     # LayerNorm eps (PyTorch default)
NEG_INF = -1e30


def _layer_norm(x, gamma, beta):
    mu = jnp.mean(x, axis=-1, keepdims=True)
    var = jnp.mean((x - mu) ** 2, axis=-1, keepdims=True)
    return (x - mu) * jax.lax.rsqrt(var + EPS) * gamma + beta


def encoder_layer_kernel(
    x_ref,            # (B*S, D)   f32 tokens, flattened over batch
    mask_ref,         # (B*S, B*S) f32 block-diagonal additive mask (0 / -1e30)
    wqkv_ref,         # (D, 3D)    bf16 packed q/k/v weight, head-major cols, Q pre-scaled
    bqkv_ref,         # (1, 3D)    f32 packed q/k/v bias, head-major cols, Q pre-scaled
    wo_ref,           # (D, D)     bf16 pre-transposed out_proj weight
    bo_ref,           # (1, D)     f32
    ln1_g_ref, ln1_b_ref,   # (1, D) f32
    ln2_g_ref, ln2_b_ref,   # (1, D) f32
    w1_ref,           # (D, DFF)   bf16 pre-transposed linear1 weight
    b1_ref,           # (1, DFF)   f32
    w2_ref,           # (DFF, D)   bf16 pre-transposed linear2 weight
    b2_ref,           # (1, D)     f32
    y_ref,            # (B*S, D)   f32
    attn_ref,         # (B*S, S)   f32 head-averaged attention weights
):
    x = x_ref[...]                                          # (BS, D) f32

    # ---- pre-norm 1 (f32) --------------------------------------------------
    x2 = _layer_norm(x, ln1_g_ref[0], ln1_b_ref[0])         # (BS, D)

    # ---- fused QKV projection: bf16 MXU operands, f32 accumulation ---------
    qkv = jnp.dot(x2.astype(jnp.bfloat16), wqkv_ref[...],
                  preferred_element_type=jnp.float32) + bqkv_ref[0]   # (BS, 3D)

    # ---- head split: columns are head-major [h][q|k|v][dh] (host permuted),
    #      so one width-3*DH lane slice per head + one stack gives the
    #      head-batched layout; no per-(b,h) Python unrolling. ---------------
    hsz = 3 * DH
    heads = jnp.stack([qkv[:, h * hsz:(h + 1) * hsz] for h in range(H)],
                      axis=0)                               # (H, BS, 3*DH)
    qh = heads[:, :, 0:DH].astype(jnp.bfloat16)             # (H, BS, DH)
    kh = heads[:, :, DH:2 * DH].astype(jnp.bfloat16)        # (H, BS, DH)
    vh = heads[:, :, 2 * DH:3 * DH].astype(jnp.bfloat16)    # (H, BS, DH)

    # ---- attention over the whole token slab; cross-batch pairs masked -----
    s = jnp.einsum('hqd,hkd->hqk', qh, kh,
                   preferred_element_type=jnp.float32)      # (H, BS, BS)
    s = s + mask_ref[...]                                   # broadcast over H
    s = s - jnp.max(s, axis=-1, keepdims=True)
    p = jnp.exp(s)                                          # cross-batch -> exact 0
    p = p * pl.reciprocal(jnp.sum(p, axis=-1, keepdims=True), approx=True)

    ctx = jnp.einsum('hqk,hkd->hqd', p.astype(jnp.bfloat16), vh,
                     preferred_element_type=jnp.float32)    # (H, BS, DH)

    # merge heads back to (BS, D) with standard [h][dh] column order
    ctx_cat = jnp.concatenate([ctx[h] for h in range(H)], axis=-1)   # (BS, D)

    # ---- output projection + residual 1 ------------------------------------
    attn_out = jnp.dot(ctx_cat.astype(jnp.bfloat16), wo_ref[...],
                       preferred_element_type=jnp.float32) + bo_ref[0]
    src = x + attn_out

    # ---- pre-norm 2 + FFN + residual 2 --------------------------------------
    x3 = _layer_norm(src, ln2_g_ref[0], ln2_b_ref[0])
    h1 = jnp.dot(x3.astype(jnp.bfloat16), w1_ref[...],
                 preferred_element_type=jnp.float32) + b1_ref[0]
    h1 = jnp.maximum(h1, 0.0)                               # ReLU
    ff = jnp.dot(h1.astype(jnp.bfloat16), w2_ref[...],
                 preferred_element_type=jnp.float32) + b2_ref[0]
    y_ref[...] = src + ff

    # ---- head-averaged attention weights: one leading-axis reduce, then fold
    #      the block-diagonal (cross-batch p entries are exact zeros), one
    #      vectorized lane-dense store. --------------------------------------
    p_avg = jnp.sum(p, axis=0) * (1.0 / H)                  # (BS, BS)
    attn = p_avg[:, 0:S]
    for b in range(1, B):
        attn = attn + p_avg[:, b * S:(b + 1) * S]
    attn_ref[...] = attn                                    # (BS, S)


def transformer_encoder_layer(src, params):
    """src: (B, S, D) float32, params in PyTorch layout.
    Returns (out (B, S, D), attn (B, S, S))."""
    (in_w, in_b, out_w, out_b, ln1_g, ln1_b, ln2_g, ln2_b,
     w1, b1, w2, b2) = params

    # Host-side layout plumbing (free, one-time):
    #  * pre-transpose every weight (PyTorch computes y = x @ W.T + b)
    #  * fold the 1/sqrt(DH) attention scale into the Q projection weight+bias
    #  * permute QKV columns to head-major [h][q|k|v][dh] so the in-kernel head
    #    split is one contiguous lane slice per head
    #  * cast MXU weight operands to bf16 (biases / LN params stay f32)
    scale = 1.0 / (DH ** 0.5)
    col_scale = jnp.concatenate([jnp.full((D,), scale, jnp.float32),
                                 jnp.ones((2 * D,), jnp.float32)])
    wqkv = in_w.T * col_scale          # (D, 3D) cols [q|k|v][h][dh]
    bqkv = in_b * col_scale            # (1, 3D)
    perm = jnp.concatenate([
        jnp.concatenate([jnp.arange(DH) + h * DH,
                         jnp.arange(DH) + D + h * DH,
                         jnp.arange(DH) + 2 * D + h * DH])
        for h in range(H)])            # head-major column permutation
    wqkv = wqkv[:, perm].astype(jnp.bfloat16)
    bqkv = bqkv[:, perm]
    wo = out_w.T.astype(jnp.bfloat16)
    w1t = w1.T.astype(jnp.bfloat16)
    w2t = w2.T.astype(jnp.bfloat16)

    # Block-diagonal additive mask over the flattened token slab: token r may
    # attend to token c only when they belong to the same batch element.
    tok_b = jnp.arange(B * S) // S
    mask = jnp.where(tok_b[:, None] == tok_b[None, :], 0.0, NEG_INF)
    mask = mask.astype(jnp.float32)

    x_tok = src.reshape(B * S, D)      # lane/sublane-dense token slab

    args = (x_tok, mask, wqkv, bqkv, wo, out_b, ln1_g, ln1_b,
            ln2_g, ln2_b, w1t, b1, w2t, b2)

    BS = B * S
    flops = (2 * BS * D * (3 * D)          # fused QKV
             + 4 * H * BS * BS * DH        # QK^T + PV (masked slab)
             + 2 * BS * D * D              # out proj
             + 4 * BS * D * DFF)           # FFN
    bytes_accessed = (sum(int(a.size) * a.dtype.itemsize for a in args)
                      + (BS * D + BS * S) * 4)
    cost = pl.CostEstimate(flops=flops,
                           transcendentals=H * BS * BS + H * BS,
                           bytes_accessed=bytes_accessed)

    vmem_spec = lambda: pl.BlockSpec(memory_space=pltpu.MemorySpace.VMEM)
    y, attn = pl.pallas_call(
        encoder_layer_kernel,
        out_shape=(jax.ShapeDtypeStruct((BS, D), jnp.float32),
                   jax.ShapeDtypeStruct((BS, S), jnp.float32)),
        in_specs=[vmem_spec() for _ in range(len(args))],
        out_specs=(vmem_spec(), vmem_spec()),
        cost_estimate=cost,
    )(*args)

    return y.reshape(B, S, D), attn.reshape(B, S, S)


# ----------------------------- pure-JAX reference -----------------------------
def reference(src, params):
    (in_w, in_b, out_w, out_b, ln1_g, ln1_b, ln2_g, ln2_b,
     w1, b1, w2, b2) = params
    in_b = in_b[0]; out_b = out_b[0]
    ln1_g = ln1_g[0]; ln1_b = ln1_b[0]; ln2_g = ln2_g[0]; ln2_b = ln2_b[0]
    b1 = b1[0]; b2 = b2[0]

    x2 = _layer_norm(src, ln1_g, ln1_b)
    q = x2 @ in_w[:D].T + in_b[:D]
    k = x2 @ in_w[D:2 * D].T + in_b[D:2 * D]
    v = x2 @ in_w[2 * D:].T + in_b[2 * D:]
    qh = q.reshape(B, S, H, DH).transpose(0, 2, 1, 3)
    kh = k.reshape(B, S, H, DH).transpose(0, 2, 1, 3)
    vh = v.reshape(B, S, H, DH).transpose(0, 2, 1, 3)
    s = jnp.einsum("bhqd,bhkd->bhqk", qh, kh) / (DH ** 0.5)
    p = jax.nn.softmax(s, axis=-1)
    o = jnp.einsum("bhqk,bhkd->bhqd", p, vh).transpose(0, 2, 1, 3).reshape(B, S, D)
    attn_out = o @ out_w.T + out_b
    src1 = src + attn_out
    x3 = _layer_norm(src1, ln2_g, ln2_b)
    ff = jnp.maximum(x3 @ w1.T + b1, 0.0) @ w2.T + b2
    return src1 + ff, jnp.mean(p, axis=1)


# ----------------------------- main --------------------------------------------
if __name__ == "__main__":
    key = jax.random.PRNGKey(0)
    ks = jax.random.split(key, 12)

    src = jax.random.normal(ks[0], (B, S, D), jnp.float32)

    wscale = 0.05
    params = (
        jax.random.normal(ks[1], (3 * D, D), jnp.float32) * wscale,  # in_proj_weight
        jax.random.normal(ks[2], (1, 3 * D), jnp.float32) * wscale,  # in_proj_bias
        jax.random.normal(ks[3], (D, D), jnp.float32) * wscale,      # out_proj.weight
        jax.random.normal(ks[4], (1, D), jnp.float32) * wscale,      # out_proj.bias
        jnp.ones((1, D), jnp.float32),                               # norm1.weight
        jnp.zeros((1, D), jnp.float32),                              # norm1.bias
        jnp.ones((1, D), jnp.float32),                               # norm2.weight
        jnp.zeros((1, D), jnp.float32),                              # norm2.bias
        jax.random.normal(ks[5], (DFF, D), jnp.float32) * wscale,    # linear1.weight
        jax.random.normal(ks[6], (1, DFF), jnp.float32) * wscale,    # linear1.bias
        jax.random.normal(ks[7], (D, DFF), jnp.float32) * wscale,    # linear2.weight
        jax.random.normal(ks[8], (1, D), jnp.float32) * wscale,      # linear2.bias
    )

    out, attn = transformer_encoder_layer(src, params)
    out = jax.block_until_ready(out)
    attn = jax.block_until_ready(attn)

    ref_out, ref_attn = reference(src, params)
    # 2e-2 tolerance: the kernel feeds the MXU bf16 operands (f32 accumulation)
    # and uses the approximate EUP reciprocal for the softmax denominator; the
    # reference is exact f32. Residual paths / LayerNorm / softmax stay f32.
    assert jnp.allclose(out, ref_out, atol=2e-2, rtol=2e-2), "output mismatch"
    assert jnp.allclose(attn, ref_attn, atol=2e-2, rtol=2e-2), "attn mismatch"

    print("KERNEL_OK")
</pallas_src>

<mosaic_0001>
module attributes {stable_mosaic.version = 11 : i64} {
  func.func @encoder_layer_kernel(%arg0: memref<16x32xf32, #tpu.memory_space<vmem>>, %arg1: memref<16x16xf32, #tpu.memory_space<vmem>>, %arg2: memref<32x96xbf16, #tpu.memory_space<vmem>>, %arg3: memref<1x96xf32, #tpu.memory_space<vmem>>, %arg4: memref<32x32xbf16, #tpu.memory_space<vmem>>, %arg5: memref<1x32xf32, #tpu.memory_space<vmem>>, %arg6: memref<1x32xf32, #tpu.memory_space<vmem>>, %arg7: memref<1x32xf32, #tpu.memory_space<vmem>>, %arg8: memref<1x32xf32, #tpu.memory_space<vmem>>, %arg9: memref<1x32xf32, #tpu.memory_space<vmem>>, %arg10: memref<32x64xbf16, #tpu.memory_space<vmem>>, %arg11: memref<1x64xf32, #tpu.memory_space<vmem>>, %arg12: memref<64x32xbf16, #tpu.memory_space<vmem>>, %arg13: memref<1x32xf32, #tpu.memory_space<vmem>>, %arg14: memref<16x32xf32, #tpu.memory_space<vmem>>, %arg15: memref<16x8xf32, #tpu.memory_space<vmem>>) attributes {dimension_semantics = [], scalar_prefetch = 0 : i64, scratch_operands = 0 : i64, tpu.core_type = #tpu.core_type<tc>} {
    %c0 = arith.constant 0 : index
    %c0_0 = arith.constant 0 : index
    %0 = vector.load %arg0[%c0, %c0_0] : memref<16x32xf32, #tpu.memory_space<vmem>>, vector<16x32xf32>
    %c0_1 = arith.constant 0 : index
    %c0_2 = arith.constant 0 : index
    %1 = vector.load %arg6[%c0_1, %c0_2] : memref<1x32xf32, #tpu.memory_space<vmem>>, vector<1x32xf32>
    %2 = vector.shape_cast %1 : vector<1x32xf32> to vector<32xf32>
    %c0_3 = arith.constant 0 : index
    %c0_4 = arith.constant 0 : index
    %3 = vector.load %arg7[%c0_3, %c0_4] : memref<1x32xf32, #tpu.memory_space<vmem>>, vector<1x32xf32>
    %4 = vector.shape_cast %3 : vector<1x32xf32> to vector<32xf32>
    %cst = arith.constant dense<0.000000e+00> : vector<16xf32>
    %5 = vector.multi_reduction <add>, %0, %cst [1] : vector<16x32xf32> to vector<16xf32>
    %6 = vector.shape_cast %5 : vector<16xf32> to vector<16x1xf32>
    %cst_5 = arith.constant 3.200000e+01 : f32
    %7 = vector.broadcast %cst_5 : f32 to vector<16x1xf32>
    %8 = arith.divf %6, %7 : vector<16x1xf32>
    %9 = vector.broadcast %8 : vector<16x1xf32> to vector<16x32xf32>
    %10 = arith.subf %0, %9 : vector<16x32xf32>
    %11 = arith.mulf %10, %10 : vector<16x32xf32>
    %cst_6 = arith.constant dense<0.000000e+00> : vector<16xf32>
    %12 = vector.multi_reduction <add>, %11, %cst_6 [1] : vector<16x32xf32> to vector<16xf32>
    %13 = vector.shape_cast %12 : vector<16xf32> to vector<16x1xf32>
    %cst_7 = arith.constant 3.200000e+01 : f32
    %14 = vector.broadcast %cst_7 : f32 to vector<16x1xf32>
    %15 = arith.divf %13, %14 : vector<16x1xf32>
    %16 = vector.broadcast %8 : vector<16x1xf32> to vector<16x32xf32>
    %17 = arith.subf %0, %16 : vector<16x32xf32>
    %cst_8 = arith.constant 9.99999974E-6 : f32
    %18 = vector.broadcast %cst_8 : f32 to vector<16x1xf32>
    %19 = arith.addf %15, %18 : vector<16x1xf32>
    %20 = math.rsqrt %19 : vector<16x1xf32>
    %21 = vector.broadcast %20 : vector<16x1xf32> to vector<16x32xf32>
    %22 = arith.mulf %17, %21 : vector<16x32xf32>
    %23 = vector.shape_cast %2 : vector<32xf32> to vector<1x32xf32>
    %24 = vector.broadcast %23 : vector<1x32xf32> to vector<16x32xf32>
    %25 = arith.mulf %22, %24 : vector<16x32xf32>
    %26 = vector.shape_cast %4 : vector<32xf32> to vector<1x32xf32>
    %27 = vector.broadcast %26 : vector<1x32xf32> to vector<16x32xf32>
    %28 = arith.addf %25, %27 : vector<16x32xf32>
    %29 = arith.truncf %28 : vector<16x32xf32> to vector<16x32xbf16>
    %c0_9 = arith.constant 0 : index
    %c0_10 = arith.constant 0 : index
    %30 = vector.load %arg2[%c0_9, %c0_10] : memref<32x96xbf16, #tpu.memory_space<vmem>>, vector<32x96xbf16>
    %cst_11 = arith.constant dense<0.000000e+00> : vector<16x96xf32>
    %31 = tpu.matmul %29, %30, %cst_11 {dimension_numbers = #tpu.dot_dimension_numbers<[1], [0], [0], [1], [0, 0, 1, 1], [], []>} : vector<16x32xbf16>, vector<32x96xbf16>, vector<16x96xf32> -> vector<16x96xf32>
    %c0_12 = arith.constant 0 : index
    %c0_13 = arith.constant 0 : index
    %32 = vector.load %arg3[%c0_12, %c0_13] : memref<1x96xf32, #tpu.memory_space<vmem>>, vector<1x96xf32>
    %33 = vector.shape_cast %32 : vector<1x96xf32> to vector<96xf32>
    %34 = vector.shape_cast %33 : vector<96xf32> to vector<1x96xf32>
    %35 = vector.broadcast %34 : vector<1x96xf32> to vector<16x96xf32>
    %36 = arith.addf %31, %35 : vector<16x96xf32>
    %37 = vector.extract_strided_slice %36 {offsets = [0, 0], sizes = [16, 24], strides = [1, 1]} : vector<16x96xf32> to vector<16x24xf32>
    %38 = vector.extract_strided_slice %36 {offsets = [0, 24], sizes = [16, 24], strides = [1, 1]} : vector<16x96xf32> to vector<16x24xf32>
    %39 = vector.extract_strided_slice %36 {offsets = [0, 48], sizes = [16, 24], strides = [1, 1]} : vector<16x96xf32> to vector<16x24xf32>
    %40 = vector.extract_strided_slice %36 {offsets = [0, 72], sizes = [16, 24], strides = [1, 1]} : vector<16x96xf32> to vector<16x24xf32>
    %41 = vector.shape_cast %37 : vector<16x24xf32> to vector<1x16x24xf32>
    %42 = vector.shape_cast %38 : vector<16x24xf32> to vector<1x16x24xf32>
    %43 = vector.shape_cast %39 : vector<16x24xf32> to vector<1x16x24xf32>
    %44 = vector.shape_cast %40 : vector<16x24xf32> to vector<1x16x24xf32>
    %45 = tpu.concatenate %41, %42, %43, %44 in 0 : vector<1x16x24xf32>, vector<1x16x24xf32>, vector<1x16x24xf32>, vector<1x16x24xf32> -> vector<4x16x24xf32>
    %46 = vector.extract_strided_slice %45 {offsets = [0, 0, 0], sizes = [4, 16, 8], strides = [1, 1, 1]} : vector<4x16x24xf32> to vector<4x16x8xf32>
    %47 = arith.truncf %46 : vector<4x16x8xf32> to vector<4x16x8xbf16>
    %48 = vector.extract_strided_slice %45 {offsets = [0, 0, 8], sizes = [4, 16, 8], strides = [1, 1, 1]} : vector<4x16x24xf32> to vector<4x16x8xf32>
    %49 = arith.truncf %48 : vector<4x16x8xf32> to vector<4x16x8xbf16>
    %50 = vector.extract_strided_slice %45 {offsets = [0, 0, 16], sizes = [4, 16, 8], strides = [1, 1, 1]} : vector<4x16x24xf32> to vector<4x16x8xf32>
    %51 = arith.truncf %50 : vector<4x16x8xf32> to vector<4x16x8xbf16>
    "tpu.trace_start"() <{level = 10 : i32, message = "hqd,hkd->hqk"}> : () -> ()
    %cst_14 = arith.constant dense<0.000000e+00> : vector<4x16x16xf32>
    %52 = tpu.matmul %47, %49, %cst_14 {dimension_numbers = #tpu.dot_dimension_numbers<[2], [2], [1], [1], [0, 0, 0, 1, 1, 1], [0], [0]>} : vector<4x16x8xbf16>, vector<4x16x8xbf16>, vector<4x16x16xf32> -> vector<4x16x16xf32>
    "tpu.trace_stop"() : () -> ()
    %c0_15 = arith.constant 0 : index
    %c0_16 = arith.constant 0 : index
    %53 = vector.load %arg1[%c0_15, %c0_16] : memref<16x16xf32, #tpu.memory_space<vmem>>, vector<16x16xf32>
    %54 = vector.shape_cast %53 : vector<16x16xf32> to vector<1x16x16xf32>
    %55 = vector.broadcast %54 : vector<1x16x16xf32> to vector<4x16x16xf32>
    %56 = arith.addf %52, %55 : vector<4x16x16xf32>
    %cst_17 = arith.constant dense<0xFF800000> : vector<4x16xf32>
    %57 = vector.multi_reduction <maximumf>, %56, %cst_17 [2] : vector<4x16x16xf32> to vector<4x16xf32>
    %58 = vector.shape_cast %57 : vector<4x16xf32> to vector<4x16x1xf32>
    %59 = vector.broadcast %58 : vector<4x16x1xf32> to vector<4x16x16xf32>
    %60 = arith.subf %56, %59 : vector<4x16x16xf32>
    %61 = math.exp %60 : vector<4x16x16xf32>
    %cst_18 = arith.constant dense<0.000000e+00> : vector<4x16xf32>
    %62 = vector.multi_reduction <add>, %61, %cst_18 [2] : vector<4x16x16xf32> to vector<4x16xf32>
    %63 = vector.shape_cast %62 : vector<4x16xf32> to vector<4x16x1xf32>
    %64 = tpu.reciprocal %63 {approx = true} : vector<4x16x1xf32> -> vector<4x16x1xf32>
    %65 = vector.broadcast %64 : vector<4x16x1xf32> to vector<4x16x16xf32>
    %66 = arith.mulf %61, %65 : vector<4x16x16xf32>
    %67 = arith.truncf %66 : vector<4x16x16xf32> to vector<4x16x16xbf16>
    "tpu.trace_start"() <{level = 10 : i32, message = "hqk,hkd->hqd"}> : () -> ()
    %cst_19 = arith.constant dense<0.000000e+00> : vector<4x16x8xf32>
    %68 = tpu.matmul %67, %51, %cst_19 {dimension_numbers = #tpu.dot_dimension_numbers<[2], [1], [1], [2], [0, 0, 0, 1, 1, 2], [0], [0]>} : vector<4x16x16xbf16>, vector<4x16x8xbf16>, vector<4x16x8xf32> -> vector<4x16x8xf32>
    "tpu.trace_stop"() : () -> ()
    %69 = vector.extract_strided_slice %68 {offsets = [0, 0, 0], sizes = [1, 16, 8], strides = [1, 1, 1]} : vector<4x16x8xf32> to vector<1x16x8xf32>
    %70 = vector.shape_cast %69 : vector<1x16x8xf32> to vector<16x8xf32>
    %71 = vector.extract_strided_slice %68 {offsets = [1, 0, 0], sizes = [1, 16, 8], strides = [1, 1, 1]} : vector<4x16x8xf32> to vector<1x16x8xf32>
    %72 = vector.shape_cast %71 : vector<1x16x8xf32> to vector<16x8xf32>
    %73 = vector.extract_strided_slice %68 {offsets = [2, 0, 0], sizes = [1, 16, 8], strides = [1, 1, 1]} : vector<4x16x8xf32> to vector<1x16x8xf32>
    %74 = vector.shape_cast %73 : vector<1x16x8xf32> to vector<16x8xf32>
    %75 = vector.extract_strided_slice %68 {offsets = [3, 0, 0], sizes = [1, 16, 8], strides = [1, 1, 1]} : vector<4x16x8xf32> to vector<1x16x8xf32>
    %76 = vector.shape_cast %75 : vector<1x16x8xf32> to vector<16x8xf32>
    %77 = tpu.concatenate %70, %72, %74, %76 in 1 : vector<16x8xf32>, vector<16x8xf32>, vector<16x8xf32>, vector<16x8xf32> -> vector<16x32xf32>
    %78 = arith.truncf %77 : vector<16x32xf32> to vector<16x32xbf16>
    %c0_20 = arith.constant 0 : index
    %c0_21 = arith.constant 0 : index
    %79 = vector.load %arg4[%c0_20, %c0_21] : memref<32x32xbf16, #tpu.memory_space<vmem>>, vector<32x32xbf16>
    %cst_22 = arith.constant dense<0.000000e+00> : vector<16x32xf32>
    %80 = tpu.matmul %78, %79, %cst_22 {dimension_numbers = #tpu.dot_dimension_numbers<[1], [0], [0], [1], [0, 0, 1, 1], [], []>} : vector<16x32xbf16>, vector<32x32xbf16>, vector<16x32xf32> -> vector<16x32xf32>
    %c0_23 = arith.constant 0 : index
    %c0_24 = arith.constant 0 : index
    %81 = vector.load %arg5[%c0_23, %c0_24] : memref<1x32xf32, #tpu.memory_space<vmem>>, vector<1x32xf32>
    %82 = vector.shape_cast %81 : vector<1x32xf32> to vector<32xf32>
    %83 = vector.shape_cast %82 : vector<32xf32> to vector<1x32xf32>
    %84 = vector.broadcast %83 : vector<1x32xf32> to vector<16x32xf32>
    %85 = arith.addf %80, %84 : vector<16x32xf32>
    %86 = arith.addf %0, %85 : vector<16x32xf32>
    %c0_25 = arith.constant 0 : index
    %c0_26 = arith.constant 0 : index
    %87 = vector.load %arg8[%c0_25, %c0_26] : memref<1x32xf32, #tpu.memory_space<vmem>>, vector<1x32xf32>
    %88 = vector.shape_cast %87 : vector<1x32xf32> to vector<32xf32>
    %c0_27 = arith.constant 0 : index
    %c0_28 = arith.constant 0 : index
    %89 = vector.load %arg9[%c0_27, %c0_28] : memref<1x32xf32, #tpu.memory_space<vmem>>, vector<1x32xf32>
    %90 = vector.shape_cast %89 : vector<1x32xf32> to vector<32xf32>
    %cst_29 = arith.constant dense<0.000000e+00> : vector<16xf32>
    %91 = vector.multi_reduction <add>, %86, %cst_29 [1] : vector<16x32xf32> to vector<16xf32>
    %92 = vector.shape_cast %91 : vector<16xf32> to vector<16x1xf32>
    %cst_30 = arith.constant 3.200000e+01 : f32
    %93 = vector.broadcast %cst_30 : f32 to vector<16x1xf32>
    %94 = arith.divf %92, %93 : vector<16x1xf32>
    %95 = vector.broadcast %94 : vector<16x1xf32> to vector<16x32xf32>
    %96 = arith.subf %86, %95 : vector<16x32xf32>
    %97 = arith.mulf %96, %96 : vector<16x32xf32>
    %cst_31 = arith.constant dense<0.000000e+00> : vector<16xf32>
    %98 = vector.multi_reduction <add>, %97, %cst_31 [1] : vector<16x32xf32> to vector<16xf32>
    %99 = vector.shape_cast %98 : vector<16xf32> to vector<16x1xf32>
    %cst_32 = arith.constant 3.200000e+01 : f32
    %100 = vector.broadcast %cst_32 : f32 to vector<16x1xf32>
    %101 = arith.divf %99, %100 : vector<16x1xf32>
    %102 = vector.broadcast %94 : vector<16x1xf32> to vector<16x32xf32>
    %103 = arith.subf %86, %102 : vector<16x32xf32>
    %cst_33 = arith.constant 9.99999974E-6 : f32
    %104 = vector.broadcast %cst_33 : f32 to vector<16x1xf32>
    %105 = arith.addf %101, %104 : vector<16x1xf32>
    %106 = math.rsqrt %105 : vector<16x1xf32>
    %107 = vector.broadcast %106 : vector<16x1xf32> to vector<16x32xf32>
    %108 = arith.mulf %103, %107 : vector<16x32xf32>
    %109 = vector.shape_cast %88 : vector<32xf32> to vector<1x32xf32>
    %110 = vector.broadcast %109 : vector<1x32xf32> to vector<16x32xf32>
    %111 = arith.mulf %108, %110 : vector<16x32xf32>
    %112 = vector.shape_cast %90 : vector<32xf32> to vector<1x32xf32>
    %113 = vector.broadcast %112 : vector<1x32xf32> to vector<16x32xf32>
    %114 = arith.addf %111, %113 : vector<16x32xf32>
    %115 = arith.truncf %114 : vector<16x32xf32> to vector<16x32xbf16>
    %c0_34 = arith.constant 0 : index
    %c0_35 = arith.constant 0 : index
    %116 = vector.load %arg10[%c0_34, %c0_35] : memref<32x64xbf16, #tpu.memory_space<vmem>>, vector<32x64xbf16>
    %cst_36 = arith.constant dense<0.000000e+00> : vector<16x64xf32>
    %117 = tpu.matmul %115, %116, %cst_36 {dimension_numbers = #tpu.dot_dimension_numbers<[1], [0], [0], [1], [0, 0, 1, 1], [], []>} : vector<16x32xbf16>, vector<32x64xbf16>, vector<16x64xf32> -> vector<16x64xf32>
    %c0_37 = arith.constant 0 : index
    %c0_38 = arith.constant 0 : index
    %118 = vector.load %arg11[%c0_37, %c0_38] : memref<1x64xf32, #tpu.memory_space<vmem>>, vector<1x64xf32>
    %119 = vector.shape_cast %118 : vector<1x64xf32> to vector<64xf32>
    %120 = vector.shape_cast %119 : vector<64xf32> to vector<1x64xf32>
    %121 = vector.broadcast %120 : vector<1x64xf32> to vector<16x64xf32>
    %122 = arith.addf %117, %121 : vector<16x64xf32>
    %cst_39 = arith.constant 0.000000e+00 : f32
    %123 = vector.broadcast %cst_39 : f32 to vector<16x64xf32>
    %124 = arith.maximumf %122, %123 : vector<16x64xf32>
    %125 = arith.truncf %124 : vector<16x64xf32> to vector<16x64xbf16>
    %c0_40 = arith.constant 0 : index
    %c0_41 = arith.constant 0 : index
    %126 = vector.load %arg12[%c0_40, %c0_41] : memref<64x32xbf16, #tpu.memory_space<vmem>>, vector<64x32xbf16>
    %cst_42 = arith.constant dense<0.000000e+00> : vector<16x32xf32>
    %127 = tpu.matmul %125, %126, %cst_42 {dimension_numbers = #tpu.dot_dimension_numbers<[1], [0], [0], [1], [0, 0, 1, 1], [], []>} : vector<16x64xbf16>, vector<64x32xbf16>, vector<16x32xf32> -> vector<16x32xf32>
    %c0_43 = arith.constant 0 : index
    %c0_44 = arith.constant 0 : index
    %128 = vector.load %arg13[%c0_43, %c0_44] : memref<1x32xf32, #tpu.memory_space<vmem>>, vector<1x32xf32>
    %129 = vector.shape_cast %128 : vector<1x32xf32> to vector<32xf32>
    %130 = vector.shape_cast %129 : vector<32xf32> to vector<1x32xf32>
    %131 = vector.broadcast %130 : vector<1x32xf32> to vector<16x32xf32>
    %132 = arith.addf %127, %131 : vector<16x32xf32>
    %133 = arith.addf %86, %132 : vector<16x32xf32>
    %c0_45 = arith.constant 0 : index
    %c0_46 = arith.constant 0 : index
    %134 = vector.load %arg14[%c0_45, %c0_46] : memref<16x32xf32, #tpu.memory_space<vmem>>, vector<16x32xf32>
    tpu.vector_store %arg14[%c0_45, %c0_46], %133 {strides = array<i32>} : memref<16x32xf32, #tpu.memory_space<vmem>>, vector<16x32xf32>,
    %cst_47 = arith.constant dense<0.000000e+00> : vector<16x16xf32>
    %135 = vector.multi_reduction <add>, %66, %cst_47 [0] : vector<4x16x16xf32> to vector<16x16xf32>
    %cst_48 = arith.constant 2.500000e-01 : f32
    %136 = vector.broadcast %cst_48 : f32 to vector<16x16xf32>
    %137 = arith.mulf %135, %136 : vector<16x16xf32>
    %138 = vector.extract_strided_slice %137 {offsets = [0, 0], sizes = [16, 8], strides = [1, 1]} : vector<16x16xf32> to vector<16x8xf32>
    %139 = vector.extract_strided_slice %137 {offsets = [0, 8], sizes = [16, 8], strides = [1, 1]} : vector<16x16xf32> to vector<16x8xf32>
    %140 = arith.addf %138, %139 : vector<16x8xf32>
    %c0_49 = arith.constant 0 : index
    %c0_50 = arith.constant 0 : index
    %141 = vector.load %arg15[%c0_49, %c0_50] : memref<16x8xf32, #tpu.memory_space<vmem>>, vector<16x8xf32>
    tpu.vector_store %arg15[%c0_49, %c0_50], %140 {strides = array<i32>} : memref<16x8xf32, #tpu.memory_space<vmem>>, vector<16x8xf32>,
    return
  }
}

</mosaic_0001>

<bundles_post_ra>
// kernel: tpu_custom_call.1
= control target key start
LH: loop header
LB: loop body
LE: loop exit
PB: predicated region body
PF: predicated region fallthrough
CT: control target
= control target key end

     0   :  { %21 = vsyncpa [#allocation3], 0  ;;  %s1857_s0 = inlined_call_operand.vmem [shape: f32[16,32], index: 0, kind: input, shape index: {}]   ;;  %s1858_s1 = inlined_call_operand.vmem [shape: f32[16,16], index: 1, kind: input, shape index: {}]   ;;  %s1859_s2 = inlined_call_operand.vmem [shape: bf16[32,96], index: 2, kind: input, shape index: {}]   ;;  %s1860_s3 = inlined_call_operand.vmem [shape: f32[1,96], index: 3, kind: input, shape index: {}]   ;;  %s1861_s4 = inlined_call_operand.hbm [shape: bf16[32,32], index: 4, kind: input, shape index: {}]   ;;  %s1862_s5 = inlined_call_operand.vmem [shape: f32[1,32], index: 5, kind: input, shape index: {}]   ;;  %s1863_s6 = inlined_call_operand.hbm [shape: f32[1,32], index: 6, kind: input, shape index: {}]   ;;  %s1864_s7 = inlined_call_operand.hbm [shape: f32[1,32], index: 7, kind: input, shape index: {}]   ;;  %s1865_s8 = inlined_call_operand.hbm [shape: f32[1,32], index: 8, kind: input, shape index: {}]   ;;  %s1866_s9 = inlined_call_operand.hbm [shape: f32[1,32], index: 9, kind: input, shape index: {}]   ;;  %s1867_s10 = inlined_call_operand.vmem [shape: bf16[32,64], index: 10, kind: input, shape index: {}]   ;;  %s1868_s11 = inlined_call_operand.vmem [shape: f32[1,64], index: 11, kind: input, shape index: {}]   ;;  %s1869_s12 = inlined_call_operand.vmem [shape: bf16[64,32], index: 12, kind: input, shape index: {}]   ;;  %s1870_s13 = inlined_call_operand.vmem [shape: f32[1,32], index: 13, kind: input, shape index: {}]   ;;  %s1871_s14 = inlined_call_operand.hbm [shape: f32[16,32], index: 14, kind: output, shape index: {0}]   ;;  %s1872_s15 = inlined_call_operand.vmem [shape: f32[16,8], index: 15, kind: output, shape index: {1}]  }
   0x1   :  { %22 = vsyncpa [#allocation6], 0 }
   0x2   :  { %23 = vsyncpa [#allocation9], 0 }
   0x3   :  { %24 = vsyncpa [#allocation4], 0  ;;  %s1473_s18 = smov [#allocation5]   ;;  %s1474_s20 = smov [#allocation8]  }
   0x4   :  { %s53_s19 = sshll.u32 %s1473_s18, 4  ;;  %s73_s21 = sshll.u32 %s1474_s20, 4  ;;  %s54_s19 = int_to_ptr.vmem [resolvable:$true] %s53_s19  ;;  %s74_s21 = int_to_ptr.vmem [resolvable:$true] %s73_s21 }
   0x5   :  { %s1333_s24 = scalar_lea.hbm %s1863_s6, 16 }
   0x6   :  { %p1334_p0 = scmp.ne.s32.totalorder %s1863_s6, %s1333_s24  ;;  %p1337_p1 = scmp.lt.u32.totalorder %s1333_s24, %s1863_s6 }
   0x8   :  { %p1339_p2 = pnand %p1337_p1, %p1334_p0 }
   0xa   :  { %1342 = shalt.err (!%p1339_p2)
}
   0xb   :  { %s1343_s29 = scalar_lea.vmem %s54_s19, 16  ;;  %s1347_s30 = scalar_lea.vmem %s54_s19, 32 }
   0xc   :  { %p1344_p3 = scmp.ne.s32.totalorder %s54_s19, %s1343_s29  ;;  %p1348_p4 = scmp.lt.s32.totalorder %s54_s19, %s54_s19 }
   0xd   :  { %p1349_p5 = scmp.lt.s32.totalorder %s1347_s30, %s1343_s29 }
   0xf   :  { %p1350_p6 = por %p1349_p5, %p1348_p4 }
  0x11   :  { %p1351_p7 = pnand %p1350_p6, %p1344_p3 }
  0x13   :  { %1354 = shalt.err (!%p1351_p7)
}
  0x14   :  { %56 = dma.hbm_to_vmem [thread:$0]  %s1863_s6, 16, %s54_s19, [#allocation6]  }
  0x15   :  { %s1355_s22 = scalar_lea.hbm %s1865_s8, 16 }
  0x16   :  { %p1356_p8 = scmp.ne.s32.totalorder %s1865_s8, %s1355_s22  ;;  %p1359_p9 = scmp.lt.u32.totalorder %s1355_s22, %s1865_s8 }
  0x18   :  { %p1361_p10 = pnand %p1359_p9, %p1356_p8 }
  0x1a   :  { %1364 = shalt.err (!%p1361_p10)
}
  0x1b   :  { %s1365_s27 = scalar_lea.vmem %s74_s21, 16  ;;  %s1369_s28 = scalar_lea.vmem %s74_s21, 32 }
  0x1c   :  { %p1366_p11 = scmp.ne.s32.totalorder %s74_s21, %s1365_s27  ;;  %p1370_p12 = scmp.lt.s32.totalorder %s74_s21, %s74_s21 }
  0x1d   :  { %p1371_p13 = scmp.lt.s32.totalorder %s1369_s28, %s1365_s27 }
  0x1f   :  { %p1372_p0 = por %p1371_p13, %p1370_p12 }
  0x21   :  { %p1373_p1 = pnand %p1372_p0, %p1366_p11 }
  0x23   :  { %1376 = shalt.err (!%p1373_p1)
}
  0x24   :  { %76 = dma.hbm_to_vmem [thread:$0]  %s1865_s8, 16, %s74_s21, [#allocation9]  }
  0x25   :  { %s1475_s29 = smov [#allocation2]   ;;  %s1377_s18 = scalar_lea.hbm %s1861_s4, 256 }
  0x26   :  { %s38_s30 = sshll.u32 %s1475_s29, 4  ;;  %p1378_p2 = scmp.ne.s32.totalorder %s1861_s4, %s1377_s18  ;;  %s39_s30 = int_to_ptr.vmem [resolvable:$true] %s38_s30 }
  0x27   :  { %p1381_p3 = scmp.lt.u32.totalorder %s1377_s18, %s1861_s4 }
  0x29   :  { %p1383_p4 = pnand %p1381_p3, %p1378_p2 }
  0x2b   :  { %1386 = shalt.err (!%p1383_p4)
}
  0x2c   :  { %s1387_s25 = scalar_lea.vmem %s39_s30, 256  ;;  %p1392_p6 = scmp.lt.s32.totalorder %s39_s30, %s39_s30 }
  0x2d   :  { %p1388_p5 = scmp.ne.s32.totalorder %s39_s30, %s1387_s25  ;;  %p1393_p7 = scmp.lt.s32.totalorder %s1387_s25, %s1387_s25 }
  0x2f   :  { %p1394_p8 = por %p1393_p7, %p1392_p6 }
  0x31   :  { %p1395_p9 = pnand %p1394_p8, %p1388_p5 }
  0x33   :  { %1398 = shalt.err (!%p1395_p9)
}
  0x34   :  { %s1476_s8 = smov 64   ;;  %s1477_s21 = smov 4  }
  0x35   :  { %44 = dma.hbm_to_vmem [thread:$0]  %s1861_s4, 256, %s39_s30, [#allocation3], %s1476_s8, %s1476_s8, %s1477_s21  }
  0x36   :  { %s1478_s28 = smov [#allocation7]   ;;  %s1479_s19 = smov [#allocation10]  }
  0x37   :  { %s63_s6 = sshll.u32 %s1478_s28, 4  ;;  %s83_s29 = sshll.u32 %s1479_s19, 4  ;;  %s64_s6 = int_to_ptr.vmem [resolvable:$true] %s63_s6  ;;  %s84_s29 = int_to_ptr.vmem [resolvable:$true] %s83_s29 }
  0x38   :  { %s1399_s18 = scalar_lea.hbm %s1864_s7, 16 }
  0x39   :  { %p1400_p10 = scmp.ne.s32.totalorder %s1864_s7, %s1399_s18  ;;  %p1403_p11 = scmp.lt.u32.totalorder %s1399_s18, %s1864_s7 }
  0x3b   :  { %p1405_p12 = pnand %p1403_p11, %p1400_p10 }
  0x3d   :  { %1408 = shalt.err (!%p1405_p12)
}
  0x3e   :  { %s1409_s4 = scalar_lea.vmem %s64_s6, 16  ;;  %s1413_s30 = scalar_lea.vmem %s64_s6, 32 }
  0x3f   :  { %p1410_p13 = scmp.ne.s32.totalorder %s64_s6, %s1409_s4  ;;  %p1414_p0 = scmp.lt.s32.totalorder %s64_s6, %s64_s6 }
  0x40   :  { %p1415_p1 = scmp.lt.s32.totalorder %s1413_s30, %s1409_s4 }
  0x42   :  { %p1416_p2 = por %p1415_p1, %p1414_p0 }
  0x44   :  { %p1417_p3 = pnand %p1416_p2, %p1410_p13 }
  0x46   :  { %1420 = shalt.err (!%p1417_p3)
}
  0x47   :  { %66 = dma.hbm_to_vmem [thread:$0]  %s1864_s7, 16, %s64_s6, [#allocation6]  }
  0x48   :  { %s1421_s27 = scalar_lea.hbm %s1866_s9, 16 }
  0x49   :  { %p1422_p4 = scmp.ne.s32.totalorder %s1866_s9, %s1421_s27  ;;  %p1425_p5 = scmp.lt.u32.totalorder %s1421_s27, %s1866_s9 }
  0x4b   :  { %p1427_p6 = pnand %p1425_p5, %p1422_p4 }
  0x4d   :  { %1430 = shalt.err (!%p1427_p6)
}
  0x4e   :  { %s1431_s18 = scalar_lea.vmem %s84_s29, 16  ;;  %s1435_s20 = scalar_lea.vmem %s84_s29, 32 }
  0x4f   :  { %p1432_p7 = scmp.ne.s32.totalorder %s84_s29, %s1431_s18  ;;  %p1436_p8 = scmp.lt.s32.totalorder %s84_s29, %s84_s29 }
  0x50   :  { %p1437_p9 = scmp.lt.s32.totalorder %s1435_s20, %s1431_s18 }
  0x52   :  { %p1438_p10 = por %p1437_p9, %p1436_p8 }
  0x54   :  { %p1439_p11 = pnand %p1438_p10, %p1432_p7 }
  0x56   :  { %1442 = shalt.err (!%p1439_p11)
}
  0x57   :  { %86 = dma.hbm_to_vmem [thread:$0]  %s1866_s9, 16, %s84_s29, [#allocation9]  }
  0x58   :  { %1465 = dma.done.wait [#allocation3], 256  }
  0x59   :  { %1466 = vsyncadd [#allocation3], 4294967040 }
  0x5a   :  { %1467 = dma.done.wait [#allocation6], 32  }
  0x5b   :  { %1468 = vsyncadd [#allocation6], 4294967264 }
  0x5c   :  { %1469 = dma.done.wait [#allocation9], 32  }
  0x5d   :  { %1470 = vsyncadd [#allocation9], 4294967264  ;;  %vm115_vm0 = vcmask 261120   ;;  %v1635_v0 = vld [vmem:[%s1857_s0] sm:$0xff]  ;;  %v1640_v1 = vld [vmem:[%s1857_s0 + $0x8] sm:$0xff]  ;;  %v1480_v15 = vmov 0.0  }
  0x5e   :  { %v116_v2 = vsel %vm115_vm0, %v1635_v0, 0.0  ;;  %v119_v3 = vsel %vm115_vm0, %v1640_v1, 0.0  ;;  %v1283_v14 = vld [vmem:[%s1859_s2] sm:$0xff]   ;;  %1150 = vmatprep.subr.bf16.mxu0 %v1480_v15  ;;  %1158 = vmatprep.subr.bf16.mxu1 %v1480_v15  ;;  %v1284_v16 = vld [vmem:[%s1859_s2 + $0x8] sm:$0xff]   ;;  %vm1481_vm1 = vmmov 0   ;;  %s1482_s8 = smov 80  }
  0x5f   :  { %117 = vadd.xlane.f32.xlu0 %v116_v2  ;;  %1151 = vmatpush3.bf16.msra.mxu0 %v1283_v14  ;;  %v1090_v25 = vld [vmem:[#allocation5] ss:$0 sm:$0xff]  ;;  %v1091_v29 = vld [vmem:[#allocation7] ss:$0 sm:$0xff]  ;;  %v1092_v34 = vld [vmem:[%s1860_s3] ss:$0 sm:$0xff] }
  0x60   :  { %1154 = vmatprep.mubr.msk.bf16.mxu0 %vm1481_vm1, %v1480_v15  ;;  %1152 = vmatprep.subr.bf16.mxu0 %v1480_v15  ;;  %s1483_s21 = smov 104   ;;  %s1484_s26 = smov 56   ;;  %vm256_vm2 = vcmask 64512   ;;  %v251_v63 = vld [vmem:[%s1858_s1] sm:$0xff]  ;;  %vm454_vm3 = vcmask 130048   ;;  %vm763_vm4 = vcmask 195584  }
  0x61   :  { %1160 = vmatprep.mubr.msk.bf16.mxu1 %vm1481_vm1, %v1480_v15  ;;  %s1485_s27 = smov 120   ;;  %s1487_s17 = smov 8   ;;  %vm990_vm5 = vcmask 523264  }
  0x62   :  { %s1488_s18 = smov 16   ;;  %s1489_s20 = smov 24  }
  0x63   :  { %120 = vadd.xlane.f32.xlu0 %v119_v3  ;;  %1153 = vmatpush3.bf16.msra.mxu0 %v1284_v16  ;;  %v252_v3 = vld [vmem:[%s1858_s1 + $0x8] sm:$0xff]  ;;  %s1486_s1 = smov 112  }
  0x64   :  { %1164 = vmatprep.subr.bf16.mxu0 %v1480_v15 }
  0xec   :  { %v118_v4 = vpop.xlane.xlu0 %117 }
  0xed   :  { %v123_v5 = vmul.f32 0.03125, %v118_v4 }
  0xef   :  { %v125_v6 = vsub.f32 %v1635_v0, %v123_v5 }
  0xf0   :  { %v121_v7 = vpop.xlane.xlu0 %120 }
  0xf1   :  { %v124_v8 = vmul.f32 0.03125, %v121_v7  ;;  %v127_v9 = vmul.f32 %v125_v6, %v125_v6 }
  0xf3   :  { %v126_v10 = vsub.f32 %v1640_v1, %v124_v8  ;;  %v129_v11 = vsel %vm115_vm0, %v127_v9, 0.0 }
  0xf4   :  { %130 = vadd.xlane.f32.xlu1 %v129_v11 }
  0xf5   :  { %v128_v12 = vmul.f32 %v126_v10, %v126_v10 }
  0xf7   :  { %v132_v13 = vsel %vm115_vm0, %v128_v12, 0.0 }
  0xf8   :  { %133 = vadd.xlane.f32.xlu1 %v132_v13 }
 0x181   :  { %v131_v17 = vpop.xlane.xlu1 %130 }
 0x182   :  { %v135_v18 = vmul.f32 0.03125, %v131_v17 }
 0x184   :  { %v137_v19 = vadd.f32 1e-05, %v135_v18 }
 0x185   :  { %v134_v20 = vpop.xlane.xlu1 %133 }
 0x186   :  { %1293 = vrsqrt.f32 %v137_v19  ;;  %v136_v21 = vmul.f32 0.03125, %v134_v20 }
 0x188   :  { %v138_v22 = vadd.f32 1e-05, %v136_v21 }
 0x18a   :  { %1295 = vrsqrt.f32 %v138_v22 }
 0x190   :  { %v1294_v23 = vpop.eup %1293 }
 0x191   :  { %v141_v24 = vmul.f32 %v1294_v23, %v125_v6 }
 0x193   :  { %v149_v28 = vmul.f32 %v1090_v25, %v141_v24 }
 0x194   :  { %v1296_v26 = vpop.eup %1295 }
 0x195   :  { %v142_v27 = vmul.f32 %v1296_v26, %v126_v10  ;;  %v157_v31 = vadd.f32 %v1091_v29, %v149_v28 }
 0x197   :  { %v150_v30 = vmul.f32 %v1090_v25, %v142_v27 }
 0x199   :  { %v158_v32 = vadd.f32 %v1091_v29, %v150_v30 }
 0x19b   :  { %v159_v33 = vpack.c.bf16 %v158_v32, %v157_v31 }
 0x19d   :  { %1155 = vmatmul.mubr.msk.bf16.vlgmr.msra.gmra.mrb[0].mxu0 %vm115_vm0, %v159_v33 }
 0x19e   :  { %1166 = vmatprep.mubr.msk.bf16.mxu0 %vm1481_vm1, %v1480_v15 }
 0x270   :  { %v220_v35 = vpop.f32.mrb[0].mxu0 }
 0x271   :  { %v1156_v36 = vpop.f32.mrb[1].mxu0  ;;  %v221_v38 = vadd.f32 %v1092_v34, %v220_v35 }
 0x272   :  { %v223_v37 = vpop.f32.mrb[2].mxu0 }
 0x273   :  { %v224_v39 = vadd.f32 %v1092_v34, %v223_v37  ;;  %v1157_v40 = vpop.f32.mrb[3].mxu0 }
 0x275   :  { %v1258_v41 = vpack.i.bf16 %v224_v39, %v221_v38  ;;  %v1670_v42 = vpack.c.bf16 %v224_v39, %v221_v38 }
 0x277   :  { %1259 = vrot.lane.b32.xlu1 %v1258_v41, %s1482_s8  ;;  %1254 = vrot.lane.b32.xlu0 %v1258_v41, %s1483_s21 }
 0x27b   :  { %1264 = vrot.lane.b32.xlu1 %v1258_v41, %s1484_s26 }
 0x27f   :  { %254 = vrot.lane.b32.xlu1 %v1670_v42, %s1485_s27 }
 0x2e9   :  { %v1260_v43 = vpop.permute.xlu1 %1259  ;;  %v1255_v44 = vpop.permute.xlu0 %1254 }
 0x2ea   :  { %v1262_v45 = vunpack.i.h.bf16 %v1260_v43  ;;  %v1261_v46 = vunpack.i.l.bf16 %v1260_v43  ;;  %v1257_v47 = vunpack.i.h.bf16 %v1255_v44  ;;  %v1256_v48 = vunpack.i.l.bf16 %v1255_v44 }
 0x2ec   :  { %v1674_v49 = vpack.c.bf16 %v1262_v45, %v1261_v46  ;;  %v1676_v50 = vpack.c.bf16 %v1257_v47, %v1256_v48 }
 0x2ed   :  { %v1265_v51 = vpop.permute.xlu1 %1264 }
 0x2ee   :  { %v1267_v52 = vunpack.i.h.bf16 %v1265_v51  ;;  %v1266_v53 = vunpack.i.l.bf16 %v1265_v51  ;;  %305 = vrot.lane.b32.xlu0 %v1676_v50, %s1485_s27  ;;  %355 = vrot.lane.b32.xlu1 %v1674_v49, %s1485_s27 }
 0x2f0   :  { %v1682_v54 = vpack.c.bf16 %v1267_v52, %v1266_v53 }
 0x2f1   :  { %v255_v55 = vpop.permute.xlu1 %254 }
 0x2f2   :  { %405 = vrot.lane.b32.xlu0 %v1682_v54, %s1485_s27  ;;  %v261_v56 = vsel %vm256_vm2, %v255_v55, 0 }
 0x2f3   :  { %1159 = vmatpush3.bf16.xpose.msra.mxu1 %v261_v56 }
 0x2f4   :  { %1170 = vmatprep.subr.bf16.mxu1 %v1480_v15 }
 0x2fa   :  { %1161 = vmatmul.mubr.msk.bf16.vlgmr.msra.gmra.mrb[0].mxu1 %vm256_vm2, %v1670_v42 }
 0x2fb   :  { %1172 = vmatprep.mubr.msk.bf16.mxu1 %vm1481_vm1, %v1480_v15 }
 0x360   :  { %v306_v57 = vpop.permute.xlu0 %305  ;;  %v356_v58 = vpop.permute.xlu1 %355 }
 0x361   :  { %v311_v59 = vsel %vm256_vm2, %v306_v57, 0  ;;  %v361_v60 = vsel %vm256_vm2, %v356_v58, 0 }
 0x362   :  { %1165 = vmatpush3.bf16.xpose.msra.mxu0 %v311_v59  ;;  %1171 = vmatpush3.bf16.xpose.msra.mxu1 %v361_v60 }
 0x363   :  { %1176 = vmatprep.subr.bf16.mxu0 %v1480_v15  ;;  %1182 = vmatprep.subr.bf16.mxu1 %v1480_v15 }
 0x364   :  { %v406_v61 = vpop.permute.xlu0 %405 }
 0x365   :  { %v411_v62 = vsel %vm256_vm2, %v406_v61, 0 }
 0x369   :  { %1167 = vmatmul.mubr.msk.bf16.vlgmr.msra.gmra.mrb[4].mxu0 %vm256_vm2, %v1676_v50  ;;  %1173 = vmatmul.mubr.msk.bf16.vlgmr.msra.gmra.mrb[4].mxu1 %vm256_vm2, %v1674_v49 }
 0x36a   :  { %1177 = vmatpush3.bf16.xpose.msra.mxu0 %v411_v62  ;;  %1178 = vmatprep.mubr.msk.bf16.mxu0 %vm1481_vm1, %v1480_v15 }
 0x36b   :  { %1184 = vmatprep.mubr.msk.bf16.mxu1 %vm1481_vm1, %v1480_v15  ;;  %1188 = vmatprep.subr.bf16.mxu0 %v1480_v15 }
 0x371   :  { %1179 = vmatmul.mubr.msk.bf16.vlgmr.msra.gmra.mrb[8].mxu0 %vm256_vm2, %v1682_v54 }
 0x372   :  { %1190 = vmatprep.mubr.msk.bf16.mxu0 %vm1481_vm1, %v1480_v15 }
 0x3cd   :  { %v297_v2 = vpop.f32.mrb[0].mxu1 }
 0x3ce   :  { %v298_v4 = vadd.f32 %v297_v2, %v251_v63  ;;  %v1162_v5 = vpop.f32.mrb[1].mxu1 }
 0x3cf   :  { %v300_v6 = vpop.f32.mrb[2].mxu1 }
 0x3d0   :  { %v301_v7 = vadd.f32 %v300_v6, %v252_v3  ;;  %v1163_v8 = vpop.f32.mrb[3].mxu1  ;;  %v455_v9 = vsel %vm454_vm3, %v298_v4, -inf }
 0x3d1   :  { %456 = vmax.xlane.f32.xlu1 %v455_v9 }
 0x3d2   :  { %v458_v10 = vsel %vm454_vm3, %v301_v7, -inf }
 0x3d3   :  { %459 = vmax.xlane.f32.xlu0 %v458_v10 }
 0x43c   :  { %v347_v11 = vpop.f32.mrb[4].mxu0  ;;  %v397_v12 = vpop.f32.mrb[4].mxu1 }
 0x43d   :  { %v348_v13 = vadd.f32 %v347_v11, %v251_v63  ;;  %v398_v14 = vadd.f32 %v397_v12, %v251_v63  ;;  %v1168_v16 = vpop.f32.mrb[5].mxu0  ;;  %v1174_v17 = vpop.f32.mrb[5].mxu1 }
 0x43e   :  { %v350_v18 = vpop.f32.mrb[6].mxu0  ;;  %v400_v19 = vpop.f32.mrb[6].mxu1 }
 0x43f   :  { %v351_v20 = vadd.f32 %v350_v18, %v252_v3  ;;  %v1169_v21 = vpop.f32.mrb[7].mxu0  ;;  %v1175_v22 = vpop.f32.mrb[7].mxu1  ;;  %v467_v23 = vsel %vm454_vm3, %v398_v14, -inf  ;;  %v461_v24 = vsel %vm454_vm3, %v348_v13, -inf  ;;  %v401_v25 = vadd.f32 %v400_v19, %v252_v3 }
 0x440   :  { %468 = vmax.xlane.f32.xlu1 %v467_v23  ;;  %462 = vmax.xlane.f32.xlu0 %v461_v24 }
 0x441   :  { %v464_v26 = vsel %vm454_vm3, %v351_v20, -inf  ;;  %v470_v33 = vsel %vm454_vm3, %v401_v25, -inf }
 0x444   :  { %465 = vmax.xlane.f32.xlu0 %v464_v26  ;;  %v447_v27 = vpop.f32.mrb[8].mxu0 }
 0x445   :  { %v448_v28 = vadd.f32 %v447_v27, %v251_v63  ;;  %v1180_v29 = vpop.f32.mrb[9].mxu0 }
 0x446   :  { %v450_v30 = vpop.f32.mrb[10].mxu0 }
 0x447   :  { %v451_v31 = vadd.f32 %v450_v30, %v252_v3  ;;  %v1181_v32 = vpop.f32.mrb[11].mxu0  ;;  %v473_v34 = vsel %vm454_vm3, %v448_v28, -inf }
 0x448   :  { %471 = vmax.xlane.f32.xlu0 %v470_v33  ;;  %474 = vmax.xlane.f32.xlu1 %v473_v34 }
 0x449   :  { %v476_v35 = vsel %vm454_vm3, %v451_v31, -inf }
 0x44c   :  { %477 = vmax.xlane.f32.xlu0 %v476_v35 }
 0x459   :  { %547 = vrot.lane.b32.xlu1 %v1670_v42, %s1486_s1 }
 0x45e   :  { %v457_v39 = vpop.xlane.xlu1 %456 }
 0x45f   :  { %v479_v40 = vsub.f32 %v298_v4, %v457_v39 }
 0x460   :  { %v460_v36 = vpop.xlane.xlu0 %459 }
 0x461   :  { %v480_v37 = vsub.f32 %v301_v7, %v460_v36  ;;  %v487_v41 = vmul.f32 1.442695, %v479_v40 }
 0x463   :  { %v489_v38 = vmul.f32 1.442695, %v480_v37 }
 0x465   :  { %1297 = vpow2.f32 %v489_v38 }
 0x466   :  { %1299 = vpow2.f32 %v487_v41 }
 0x46f   :  { %v1298_v43 = vpop.eup %1297 }
 0x470   :  { %v506_v44 = vsel %vm454_vm3, %v1298_v43, 0.0  ;;  %v1300_v45 = vpop.eup %1299 }
 0x471   :  { %507 = vadd.xlane.f32.xlu0 %v506_v44  ;;  %v503_v46 = vsel %vm454_vm3, %v1300_v45, 0.0 }
 0x47d   :  { %504 = vadd.xlane.f32.xlu1 %v503_v46 }
 0x4cd   :  { %v469_v47 = vpop.xlane.xlu1 %468  ;;  %v463_v48 = vpop.xlane.xlu0 %462 }
 0x4ce   :  { %v483_v51 = vsub.f32 %v398_v14, %v469_v47  ;;  %v481_v42 = vsub.f32 %v348_v13, %v463_v48 }
 0x4d0   :  { %v491_v52 = vmul.f32 1.442695, %v481_v42  ;;  %v495_v53 = vmul.f32 1.442695, %v483_v51 }
 0x4d1   :  { %v466_v55 = vpop.xlane.xlu0 %465 }
 0x4d2   :  { %v482_v56 = vsub.f32 %v351_v20, %v466_v55  ;;  %1301 = vpow2.f32 %v491_v52 }
 0x4d3   :  { %1303 = vpow2.f32 %v495_v53 }
 0x4d4   :  { %v493_v57 = vmul.f32 1.442695, %v482_v56 }
 0x4d5   :  { %v472_v58 = vpop.xlane.xlu0 %471  ;;  %v475_v59 = vpop.xlane.xlu1 %474 }
 0x4d6   :  { %1305 = vpow2.f32 %v493_v57  ;;  %v484_v60 = vsub.f32 %v401_v25, %v472_v58  ;;  %v485_v61 = vsub.f32 %v448_v28, %v475_v59 }
 0x4d8   :  { %v497_v62 = vmul.f32 1.442695, %v484_v60  ;;  %v499_v63 = vmul.f32 1.442695, %v485_v61 }
 0x4d9   :  { %v548_v2 = vpop.permute.xlu1 %547  ;;  %v478_v3 = vpop.xlane.xlu0 %477 }
 0x4da   :  { %1307 = vpow2.f32 %v497_v62  ;;  %v486_v4 = vsub.f32 %v451_v31, %v478_v3  ;;  %1183 = vmatpush3.bf16.msra.mxu1 %v548_v2 }
 0x4db   :  { %1309 = vpow2.f32 %v499_v63  ;;  %1194 = vmatprep.subr.bf16.mxu1 %v1480_v15 }
 0x4dc   :  { %v501_v5 = vmul.f32 1.442695, %v486_v4  ;;  %v1302_v6 = vpop.eup %1301 }
 0x4dd   :  { %v509_v7 = vsel %vm454_vm3, %v1302_v6, 0.0  ;;  %v1304_v8 = vpop.eup %1303 }
 0x4de   :  { %1311 = vpow2.f32 %v501_v5  ;;  %510 = vadd.xlane.f32.xlu1 %v509_v7  ;;  %v515_v11 = vsel %vm454_vm3, %v1304_v8, 0.0 }
 0x4e0   :  { %v1306_v9 = vpop.eup %1305 }
 0x4e1   :  { %v512_v10 = vsel %vm454_vm3, %v1306_v9, 0.0 }
 0x4e2   :  { %513 = vadd.xlane.f32.xlu0 %v512_v10  ;;  %516 = vadd.xlane.f32.xlu1 %v515_v11 }
 0x4e4   :  { %v1308_v12 = vpop.eup %1307 }
 0x4e5   :  { %v1310_v13 = vpop.eup %1309  ;;  %v518_v14 = vsel %vm454_vm3, %v1308_v12, 0.0 }
 0x4e6   :  { %v521_v16 = vsel %vm454_vm3, %v1310_v13, 0.0  ;;  %519 = vadd.xlane.f32.xlu0 %v518_v14 }
 0x4e7   :  { %522 = vadd.xlane.f32.xlu1 %v521_v16 }
 0x4e8   :  { %v1734_v17 = vpop.eup %1311 }
 0x4e9   :  { %v524_v18 = vsel %vm454_vm3, %v1734_v17, 0.0 }
 0x4ea   :  { %525 = vadd.xlane.f32.xlu0 %v524_v18 }
 0x4f8   :  { %641 = vrot.lane.b32.xlu1 %v1674_v49, %s1486_s1 }
 0x4fc   :  { %688 = vrot.lane.b32.xlu1 %v1682_v54, %s1486_s1 }
 0x4fe   :  { %v508_v19 = vpop.xlane.xlu0 %507 }
 0x4ff   :  { %1313 = vrcp.f32 %v508_v19 }
 0x500   :  { %594 = vrot.lane.b32.xlu0 %v1676_v50, %s1486_s1 }
 0x509   :  { %v1314_v21 = vpop.eup %1313 }
 0x50a   :  { %v505_v20 = vpop.xlane.xlu1 %504  ;;  %v536_v23 = vmul.f32 %v1314_v21, %v1298_v43 }
 0x50b   :  { %1315 = vrcp.f32 %v505_v20 }
 0x50c   :  { %v1046_v41 = vsel %vm454_vm3, %v536_v23, 0.0 }
 0x515   :  { %v1316_v22 = vpop.eup %1315 }
 0x516   :  { %v535_v24 = vmul.f32 %v1316_v22, %v1300_v45 }
 0x518   :  { %v543_v25 = vpack.c.bf16 %v536_v23, %v535_v24  ;;  %v1039_v33 = vsel %vm454_vm3, %v535_v24, 0.0 }
 0x51a   :  { %1185 = vmatmul.mubr.msk.bf16.vlgmr.msra.gmra.mrb[8].mxu1 %vm454_vm3, %v543_v25 }
 0x51b   :  { %1196 = vmatprep.mubr.msk.bf16.mxu1 %vm1481_vm1, %v1480_v15 }
 0x56b   :  { %v511_v49 = vpop.xlane.xlu1 %510 }
 0x56c   :  { %1317 = vrcp.f32 %v511_v49 }
 0x56f   :  { %v514_v54 = vpop.xlane.xlu0 %513  ;;  %v517_v26 = vpop.xlane.xlu1 %516 }
 0x570   :  { %1319 = vrcp.f32 %v514_v54 }
 0x571   :  { %1321 = vrcp.f32 %v517_v26 }
 0x573   :  { %v520_v50 = vpop.xlane.xlu0 %519 }
 0x574   :  { %v523_v27 = vpop.xlane.xlu1 %522  ;;  %1323 = vrcp.f32 %v520_v50 }
 0x575   :  { %1325 = vrcp.f32 %v523_v27 }
 0x576   :  { %v1318_v28 = vpop.eup %1317 }
 0x577   :  { %v526_v29 = vpop.xlane.xlu0 %525  ;;  %v537_v30 = vmul.f32 %v1318_v28, %v1302_v6  ;;  %v1285_v6 = vld [vmem:[#allocation2] sm:$0xff]  }
 0x578   :  { %v642_v31 = vpop.permute.xlu1 %641  ;;  %1327 = vrcp.f32 %v526_v29 }
 0x579   :  { %1195 = vmatpush3.bf16.msra.mxu1 %v642_v31  ;;  %v1040_v34 = vsel %vm454_vm3, %v537_v30, 0.0 }
 0x57a   :  { %v1320_v32 = vpop.eup %1319  ;;  %1206 = vmatprep.subr.bf16.mxu1 %v1480_v15  ;;  %v1041_v38 = vadd.f32 %v1040_v34, %v1039_v33 }
 0x57b   :  { %v1322_v35 = vpop.eup %1321  ;;  %v538_v36 = vmul.f32 %v1320_v32, %v1306_v9  ;;  %v595_v37 = vpop.permute.xlu0 %594  ;;  %v1286_v9 = vld [vmem:[#allocation2 + $0x8] sm:$0xff]  }
 0x57c   :  { %v539_v39 = vmul.f32 %v1322_v35, %v1304_v8  ;;  %1189 = vmatpush3.bf16.msra.mxu0 %v595_v37  ;;  %v689_v51 = vpop.permute.xlu1 %688  ;;  %v1104_v37 = vld [vmem:[%s1862_s5] ss:$0 sm:$0xff] }
 0x57d   :  { %v544_v40 = vpack.c.bf16 %v538_v36, %v537_v30  ;;  %1200 = vmatprep.subr.bf16.mxu0 %v1480_v15  ;;  %v1047_v43 = vsel %vm454_vm3, %v538_v36, 0.0 }
 0x57e   :  { %v1324_v44 = vpop.eup %1323  ;;  %v1048_v45 = vadd.f32 %v1047_v43, %v1046_v41  ;;  %v1042_v46 = vsel %vm454_vm3, %v539_v39, 0.0 }
 0x57f   :  { %v1326_v47 = vpop.eup %1325  ;;  %v540_v48 = vmul.f32 %v1324_v44, %v1308_v12  ;;  %1191 = vmatmul.mubr.msk.bf16.vlgmr.msra.gmra.mrb[12].mxu0 %vm454_vm3, %v544_v40  ;;  %v1043_v42 = vadd.f32 %v1042_v46, %v1041_v38 }
 0x580   :  { %v541_v52 = vmul.f32 %v1326_v47, %v1310_v13  ;;  %1201 = vmatpush3.bf16.msra.mxu0 %v689_v51  ;;  %1202 = vmatprep.mubr.msk.bf16.mxu0 %vm1481_vm1, %v1480_v15 }
 0x581   :  { %v545_v53 = vpack.c.bf16 %v540_v48, %v539_v39  ;;  %v1049_v55 = vsel %vm454_vm3, %v540_v48, 0.0  ;;  %1214 = vmatprep.subr.bf16.mxu0 %v1480_v15 }
 0x582   :  { %v1328_v56 = vpop.eup %1327  ;;  %v1050_v57 = vadd.f32 %v1049_v55, %v1048_v45  ;;  %v1044_v58 = vsel %vm454_vm3, %v541_v52, 0.0 }
 0x583   :  { %v542_v59 = vmul.f32 %v1328_v56, %v1734_v17  ;;  %1197 = vmatmul.mubr.msk.bf16.vlgmr.msra.gmra.mrb[12].mxu1 %vm454_vm3, %v545_v53  ;;  %v1762_v60 = vadd.f32 %v1044_v58, %v1043_v42 }
 0x584   :  { %1210 = vmatprep.mubr.msk.bf16.mxu1 %vm1481_vm1, %v1480_v15  ;;  %1207 = vmatpush3.bf16.msra.mxu1 %v1285_v6 }
 0x585   :  { %v546_v61 = vpack.c.bf16 %v542_v59, %v541_v52  ;;  %v1051_v62 = vsel %vm454_vm3, %v542_v59, 0.0  ;;  %1208 = vmatprep.subr.bf16.mxu1 %v1480_v15 }
 0x586   :  { %v1767_v63 = vadd.f32 %v1051_v62, %v1050_v57 }
 0x587   :  { %1203 = vmatmul.mubr.msk.bf16.vlgmr.msra.gmra.mrb[16].mxu0 %vm454_vm3, %v546_v61 }
 0x588   :  { %1218 = vmatprep.mubr.msk.bf16.mxu0 %vm1481_vm1, %v1480_v15  ;;  %1209 = vmatpush3.bf16.msra.mxu1 %v1286_v9  ;;  %v1054_v51 = vmul.f32 0.25, %v1767_v63  ;;  %v1053_v63 = vmul.f32 0.25, %v1762_v60  ;;  %v1290_v60 = vld [vmem:[%s1869_s12 + $0x8] sm:$0xff]  }
 0x589   :  { %1222 = vmatprep.subr.bf16.mxu1 %v1480_v15 }
 0x5ed   :  { %v587_v2 = vpop.f32.mrb[8].mxu1 }
 0x5ee   :  { %v1186_v3 = vpop.f32.mrb[9].mxu1 }
 0x5ef   :  { %v590_v4 = vpop.f32.mrb[10].mxu1  ;;  %v1288_v3 = vld [vmem:[%s1867_s10 + $0x8] sm:$0xff]  }
 0x5f0   :  { %v1187_v5 = vpop.f32.mrb[11].mxu1 }
 0x652   :  { %v634_v7 = vpop.f32.mrb[12].mxu0 }
 0x653   :  { %v1192_v8 = vpop.f32.mrb[13].mxu0 }
 0x654   :  { %v637_v10 = vpop.f32.mrb[14].mxu0 }
 0x655   :  { %v1268_v11 = vpack.i.bf16 %v637_v10, %v634_v7  ;;  %v1193_v12 = vpop.f32.mrb[15].mxu0 }
 0x656   :  { %v681_v13 = vpop.f32.mrb[12].mxu1 }
 0x657   :  { %v1198_v14 = vpop.f32.mrb[13].mxu1  ;;  %1269 = vrot.lane.b32.xlu1 %v1268_v11, %s1487_s17 }
 0x658   :  { %v684_v16 = vpop.f32.mrb[14].mxu1 }
 0x659   :  { %v1273_v17 = vpack.i.bf16 %v684_v16, %v681_v13  ;;  %v1199_v18 = vpop.f32.mrb[15].mxu1  ;;  %v1108_v16 = vld [vmem:[#allocation8] ss:$0 sm:$0xff] }
 0x65a   :  { %v728_v19 = vpop.f32.mrb[16].mxu0 }
 0x65b   :  { %1274 = vrot.lane.b32.xlu0 %v1273_v17, %s1488_s18  ;;  %v1204_v20 = vpop.f32.mrb[17].mxu0 }
 0x65c   :  { %v731_v21 = vpop.f32.mrb[18].mxu0  ;;  %v1109_v20 = vld [vmem:[#allocation10] ss:$0 sm:$0xff] }
 0x65d   :  { %v1278_v22 = vpack.i.bf16 %v731_v21, %v728_v19  ;;  %v1205_v23 = vpop.f32.mrb[19].mxu0 }
 0x65f   :  { %1279 = vrot.lane.b32.xlu1 %v1278_v22, %s1489_s20 }
 0x6c9   :  { %v1270_v24 = vpop.permute.xlu1 %1269 }
 0x6ca   :  { %v1272_v49 = vunpack.i.h.bf16 %v1270_v24  ;;  %v1271_v54 = vunpack.i.l.bf16 %v1270_v24 }
 0x6cc   :  { %v760_v28 = vsel %vm256_vm2, %v590_v4, %v1272_v49  ;;  %v759_v29 = vsel %vm256_vm2, %v587_v2, %v1271_v54  ;;  %v1287_v2 = vld [vmem:[%s1867_s10] sm:$0xff]   ;;  %v1292_v49 = vld [vmem:[%s1869_s12 + $0x18] sm:$0xff]  }
 0x6cd   :  { %v1275_v25 = vpop.permute.xlu0 %1274  ;;  %1215 = vmatpush3.bf16.msra.mxu0 %v1287_v2  ;;  %v1289_v4 = vld [vmem:[%s1869_s12] sm:$0xff]  }
 0x6ce   :  { %v1277_v26 = vunpack.i.h.bf16 %v1275_v25  ;;  %v1276_v50 = vunpack.i.l.bf16 %v1275_v25  ;;  %1216 = vmatprep.subr.bf16.mxu0 %v1480_v15  ;;  %v1291_v25 = vld [vmem:[%s1869_s12 + $0x10] sm:$0xff]   ;;  %v1110_v54 = vld [vmem:[%s1868_s11] ss:$0 sm:$0xff]  ;;  %s1490_s11 = smov [#allocation11]  }
 0x6cf   :  { %s1072_s12 = sshll.u32 %s1490_s11, 4  ;;  %s1073_s12 = int_to_ptr.vmem [resolvable:$true] %s1072_s12 }
 0x6d0   :  { %v761_v32 = vsel %vm454_vm3, %v759_v29, %v1276_v50  ;;  %v762_v33 = vsel %vm454_vm3, %v760_v28, %v1277_v26  ;;  %s1443_s16 = scalar_lea.vmem %s1073_s12, 256  ;;  %p1448_p13 = scmp.lt.s32.totalorder %s1073_s12, %s1073_s12 }
 0x6d1   :  { %v1280_v27 = vpop.permute.xlu1 %1279  ;;  %1217 = vmatpush3.bf16.msra.mxu0 %v1288_v3  ;;  %p1444_p12 = scmp.ne.s32.totalorder %s1073_s12, %s1443_s16  ;;  %p1449_p0 = scmp.lt.s32.totalorder %s1443_s16, %s1443_s16 }
 0x6d2   :  { %v1282_v30 = vunpack.i.h.bf16 %v1280_v27  ;;  %v1281_v31 = vunpack.i.l.bf16 %v1280_v27 }
 0x6d3   :  { %p1450_p1 = por %p1449_p0, %p1448_p13 }
 0x6d4   :  { %v765_v34 = vsel %vm763_vm4, %v762_v33, %v1282_v30  ;;  %v764_v35 = vsel %vm763_vm4, %v761_v32, %v1281_v31 }
 0x6d5   :  { %v766_v36 = vpack.c.bf16 %v765_v34, %v764_v35  ;;  %p1451_p2 = pnand %p1450_p1, %p1444_p12 }
 0x6d7   :  { %1211 = vmatmul.mubr.msk.bf16.vlgmr.msra.gmra.mrb[16].mxu1 %vm115_vm0, %v766_v36 }
 0x6d8   :  { %1230 = vmatprep.mubr.msk.bf16.mxu1 %vm1481_vm1, %v1480_v15  ;;  %1223 = vmatpush3.bf16.msra.mxu1 %v1289_v4 }
 0x6d9   :  { %1224 = vmatprep.subr.bf16.mxu1 %v1480_v15 }
 0x6dc   :  { %1225 = vmatpush3.bf16.msra.mxu1 %v1290_v60 }
 0x6dd   :  { %1226 = vmatprep.subr.bf16.mxu1 %v1480_v15 }
 0x6e0   :  { %1227 = vmatpush3.bf16.msra.mxu1 %v1291_v25 }
 0x6e1   :  { %1228 = vmatprep.subr.bf16.mxu1 %v1480_v15  ;;  %v1114_v15 = vld [vmem:[%s1870_s13] ss:$0 sm:$0xff] }
 0x6e4   :  { %1229 = vmatpush3.bf16.msra.mxu1 %v1292_v49 }
 0x7aa   :  { %v827_v38 = vpop.f32.mrb[16].mxu1 }
 0x7ab   :  { %v828_v39 = vadd.f32 %v1104_v37, %v827_v38  ;;  %v1212_v40 = vpop.f32.mrb[17].mxu1 }
 0x7ac   :  { %v830_v41 = vpop.f32.mrb[18].mxu1 }
 0x7ad   :  { %v1786_v43 = vadd.f32 %v828_v39, %v1635_v0  ;;  %v831_v44 = vadd.f32 %v1104_v37, %v830_v41  ;;  %v1213_v45 = vpop.f32.mrb[19].mxu1 }
 0x7af   :  { %v1789_v46 = vadd.f32 %v831_v44, %v1640_v1  ;;  %v838_v47 = vsel %vm115_vm0, %v1786_v43, 0.0 }
 0x7b0   :  { %839 = vadd.xlane.f32.xlu0 %v838_v47 }
 0x7b1   :  { %v841_v48 = vsel %vm115_vm0, %v1789_v46, 0.0 }
 0x7b2   :  { %842 = vadd.xlane.f32.xlu1 %v841_v48 }
 0x7c3   :  { %1059 = vrot.lane.b32.xlu1 %v1054_v51, %s1485_s27 }
 0x83d   :  { %v840_v42 = vpop.xlane.xlu0 %839 }
 0x83e   :  { %v844_v0 = vmul.f32 0.03125, %v840_v42 }
 0x83f   :  { %v843_v52 = vpop.xlane.xlu1 %842 }
 0x840   :  { %v846_v53 = vsub.f32 %v1786_v43, %v844_v0  ;;  %v845_v55 = vmul.f32 0.03125, %v843_v52 }
 0x842   :  { %v847_v1 = vsub.f32 %v1789_v46, %v845_v55  ;;  %v848_v56 = vmul.f32 %v846_v53, %v846_v53 }
 0x843   :  { %v1060_v57 = vpop.permute.xlu1 %1059 }
 0x844   :  { %v1064_v58 = vadd.f32 %v1060_v57, %v1054_v51  ;;  %v850_v59 = vsel %vm115_vm0, %v848_v56, 0.0  ;;  %v849_v61 = vmul.f32 %v847_v1, %v847_v1 }
 0x845   :  { %851 = vadd.xlane.f32.xlu0 %v850_v59 }
 0x846   :  { %1066 = vst.msk [vmem:[%s1872_s15 + $0x8] sm:$0xff] %vm256_vm2, %v1064_v58  ;;  %v853_v62 = vsel %vm115_vm0, %v849_v61, 0.0 }
 0x849   :  { %854 = vadd.xlane.f32.xlu0 %v853_v62 }
 0x85f   :  { %1057 = vrot.lane.b32.xlu0 %v1053_v63, %s1485_s27 }
 0x8d2   :  { %v852_v5 = vpop.xlane.xlu0 %851 }
 0x8d3   :  { %v856_v6 = vmul.f32 0.03125, %v852_v5 }
 0x8d5   :  { %v858_v7 = vadd.f32 1e-05, %v856_v6 }
 0x8d6   :  { %v855_v8 = vpop.xlane.xlu0 %854 }
 0x8d7   :  { %1329 = vrsqrt.f32 %v858_v7  ;;  %v857_v9 = vmul.f32 0.03125, %v855_v8 }
 0x8d9   :  { %v859_v10 = vadd.f32 1e-05, %v857_v9 }
 0x8da   :  { %v1058_v11 = vpop.permute.xlu0 %1057 }
 0x8db   :  { %1331 = vrsqrt.f32 %v859_v10  ;;  %v1063_v12 = vadd.f32 %v1058_v11, %v1053_v63 }
 0x8dd   :  { %1065 = vst.msk [vmem:[%s1872_s15] sm:$0xff] %vm256_vm2, %v1063_v12 }
 0x8e1   :  { %v1330_v13 = vpop.eup %1329 }
 0x8e2   :  { %v862_v14 = vmul.f32 %v1330_v13, %v846_v53 }
 0x8e4   :  { %v870_v18 = vmul.f32 %v1108_v16, %v862_v14 }
 0x8e5   :  { %v1332_v17 = vpop.eup %1331 }
 0x8e6   :  { %v863_v19 = vmul.f32 %v1332_v17, %v847_v1  ;;  %v878_v22 = vadd.f32 %v1109_v20, %v870_v18 }
 0x8e8   :  { %v871_v21 = vmul.f32 %v1108_v16, %v863_v19 }
 0x8ea   :  { %v879_v23 = vadd.f32 %v1109_v20, %v871_v21 }
 0x8ec   :  { %v880_v24 = vpack.c.bf16 %v879_v23, %v878_v22 }
 0x8ee   :  { %1219 = vmatmul.mubr.msk.bf16.vlgmr.msra.gmra.mrb[20].mxu0 %vm115_vm0, %v880_v24 }
 0x9c1   :  { %v941_v26 = vpop.f32.mrb[20].mxu0 }
 0x9c2   :  { %v942_v50 = vadd.f32 %v1110_v54, %v941_v26  ;;  %v1220_v27 = vpop.f32.mrb[21].mxu0 }
 0x9c3   :  { %v944_v28 = vpop.f32.mrb[22].mxu0 }
 0x9c4   :  { %v945_v29 = vadd.f32 %v1110_v54, %v944_v28  ;;  %v1221_v30 = vpop.f32.mrb[23].mxu0  ;;  %v948_v31 = vmax.f32 %v942_v50, 0.0 }
 0x9c6   :  { %v949_v32 = vmax.f32 %v945_v29, 0.0 }
 0x9c8   :  { %v950_v33 = vpack.c.bf16 %v949_v32, %v948_v31 }
 0x9ca   :  { %1231 = vmatmul.mubr.msk.bf16.vlgmr.msra.gmra.mrb[20].mxu1 %vm990_vm5, %v950_v33 }
 0xa9d   :  { %v1028_v34 = vpop.f32.mrb[20].mxu1 }
 0xa9e   :  { %v1029_v35 = vadd.f32 %v1114_v15, %v1028_v34  ;;  %v1232_v36 = vpop.f32.mrb[21].mxu1 }
 0xa9f   :  { %v1031_v37 = vpop.f32.mrb[22].mxu1 }
 0xaa0   :  { %v1035_v38 = vadd.f32 %v1029_v35, %v1786_v43  ;;  %v1032_v39 = vadd.f32 %v1114_v15, %v1031_v37  ;;  %v1233_v40 = vpop.f32.mrb[23].mxu1 }
 0xaa2   :  { %1037 = vst.msk [vmem:[#allocation11] sm:$0xff] %vm115_vm0, %v1035_v38  ;;  %v1036_v41 = vadd.f32 %v1032_v39, %v1789_v46 }
 0xaa4   :  { %1038 = vst.msk [vmem:[#allocation11 + $0x8] sm:$0xff] %vm115_vm0, %v1036_v41 }
 0xaa5   :  { %1454 = shalt.err (!%p1451_p2)
}
 0xaa6   :  { %s1455_s18 = scalar_lea.hbm %s1871_s14, 256 }
 0xaa7   :  { %p1456_p3 = scmp.ne.s32.totalorder %s1871_s14, %s1455_s18  ;;  %p1459_p4 = scmp.lt.u32.totalorder %s1455_s18, %s1871_s14 }
 0xaa9   :  { %p1461_p5 = pnand %p1459_p4, %p1456_p3 }
 0xaab   :  { %1464 = shalt.err (!%p1461_p5)
}
 0xaac   :  { %s1491_s22 = smov 128  }
 0xaad   :  { %1078 = dma.vmem_to_hbm [thread:$0]  %s1073_s12, 256, %s1871_s14, [#allocation4], %s1491_s22, %s1491_s22, %s1487_s17  }
 0xaae   :  { %1471 = dma.done.wait [#allocation4], 256  }
 0xaaf   :  { %1472 = vsyncadd [#allocation4], 4294967040 }
 0xab0   :  { %1086 = vsyncpa [#allocation3], 1 }
 0xab1   :  { %1087 = vsyncpa [#allocation6], 1 }
 0xab2   :  { %1088 = vsyncpa [#allocation9], 1 }
 0xab3   :  { %1089 = vsyncpa [#allocation4], 1 }

</bundles_post_ra>
